<compile_context>
chip_gen: v7x
topology: tpu7x:2x2x1
jax: 0.10.0
libtpu: 0.0.40
codegen_flags: <defaults>
</compile_context>

<pallas_src>
import jax
import jax.numpy as jnp
import numpy as np
from jax.experimental import pallas as pl
from jax.experimental.pallas import tpu as pltpu


_MAX_INFLIGHT_DMAS = 8


def _pack_indices(t: int, alpha: int) -> list[int]:
    """Host-side replica of torch.linspace(0, T-1, T//alpha).long()."""
    t_slow = t // alpha
    if t_slow <= 0:
        return []
    if t_slow == 1:
        return [0]
    # float64 linspace then truncation toward zero (matches .long() semantics).
    # TODO(synk): if bit-exact parity with torch's float32 linspace matters for
    # pathological T/alpha, replicate torch's float32 step recipe exactly.
    vals = np.linspace(0.0, float(t - 1), t_slow, dtype=np.float64)
    return [int(v) for v in vals]


def _make_gather_kernel(indices: list[int], n_slots: int):
    """Build a kernel gathering the given temporal slices directly HBM->HBM."""
    t_slow = len(indices)

    def kernel(frames_hbm, slow_hbm, sems):
        # Descriptor for: slow[:, i, :] = frames[:, indices[i], :]
        # All descriptors have identical shapes, so wait() on a freshly built
        # descriptor for the same slot matches the bytes of the earlier start().
        def copy(i, slot):
            t = indices[i]  # static Python int -> immediate-address descriptor
            return pltpu.make_async_copy(
                frames_hbm.at[:, pl.ds(t, 1), :],
                slow_hbm.at[:, pl.ds(i, 1), :],
                sems.at[slot],
            )

        # Issue all gather DMAs, keeping at most n_slots in flight
        # (slot reuse mod n_slots; wait for the previous occupant first).
        # t_slow is small and static, so a Python loop (full unroll) is fine.
        for i in range(t_slow):
            slot = i % n_slots
            if i >= n_slots:
                copy(i - n_slots, slot).wait()
            copy(i, slot).start()

        # Drain the tail (last min(n_slots, t_slow) DMAs still in flight).
        tail = min(n_slots, t_slow)
        for j in range(t_slow - tail, t_slow):
            copy(j, j % n_slots).wait()

    return kernel


def pack_pathway(frames: jax.Array, slowfast_alpha: int = 4):
    """JAX/Pallas equivalent of PackPathway.forward.

    Returns [slow_pathway, fast_pathway], matching the PyTorch module.
    """
    C, T, H, W = frames.shape
    indices = _pack_indices(T, slowfast_alpha)
    t_slow = len(indices)

    fast = frames  # identity passthrough, same as PyTorch returning `frames`

    if t_slow == 0:
        # Degenerate case (T < alpha): empty slow pathway, no kernel launch.
        return [jnp.zeros((C, 0, H, W), frames.dtype), fast]

    # Free row-major reshape: one temporal slice becomes C contiguous chunks
    # of H*W elements -> big, contiguous, lane-dense DMA transfers.
    frames2 = frames.reshape(C, T, H * W)

    n_slots = min(_MAX_INFLIGHT_DMAS, t_slow)
    itemsize = int(np.dtype(frames.dtype).itemsize)

    slow2 = pl.pallas_call(
        _make_gather_kernel(indices, n_slots),
        out_shape=jax.ShapeDtypeStruct((C, t_slow, H * W), frames.dtype),
        in_specs=[pl.BlockSpec(memory_space=pl.ANY)],   # frames stay in HBM
        out_specs=pl.BlockSpec(memory_space=pl.ANY),    # slow written via DMA
        scratch_shapes=[pltpu.SemaphoreType.DMA((n_slots,))],
        compiler_params=pltpu.CompilerParams(
            has_side_effects=True,   # output only written via manual DMA
        ),
        cost_estimate=pl.CostEstimate(
            flops=0,
            transcendentals=0,
            bytes_accessed=2 * C * t_slow * H * W * itemsize,
        ),
    )(frames2)

    slow = slow2.reshape(C, t_slow, H, W)  # free reshape back
    return [slow, fast]


if __name__ == "__main__":
    key = jax.random.PRNGKey(0)
    # Small self-test shape: 3 channels, 32 frames, 16x16 spatial, alpha=4.
    # H*W = 256 is lane-dense (multiple of 128), as is the real 224*224 case.
    # NOTE: this tiny shape is for correctness only; do not benchmark on it
    # (per-descriptor chunks are only 1 KB here vs ~200 KB for real inputs).
    C, T, H, W = 3, 32, 16, 16
    alpha = 4
    frames = jax.random.normal(key, (C, T, H, W), dtype=jnp.float32)

    slow, fast = pack_pathway(frames, slowfast_alpha=alpha)
    jax.block_until_ready(slow)
    jax.block_until_ready(fast)

    # Reference check (plain JAX gather with the same host-computed indices).
    idx_ref = jnp.asarray(_pack_indices(T, alpha), dtype=jnp.int32)
    slow_ref = jnp.take(frames, idx_ref, axis=1)
    assert slow.shape == (C, T // alpha, H, W)
    assert fast.shape == (C, T, H, W)
    assert jnp.array_equal(slow, slow_ref)
    assert jnp.array_equal(fast, frames)

    print("KERNEL_OK")
</pallas_src>

<mosaic_0001>
module attributes {stable_mosaic.version = 11 : i64} {
  func.func @kernel(%arg0: memref<3x32x256xf32, #tpu.memory_space<any>>, %arg1: memref<3x8x256xf32, #tpu.memory_space<any>>, %arg2: memref<8x!tpu.dma_semaphore, #tpu.memory_space<semaphore_mem>>) attributes {dimension_semantics = [], scalar_prefetch = 0 : i64, scratch_operands = 1 : i64, tpu.core_type = #tpu.core_type<tc>} {
    %c0_i32 = arith.constant 0 : i32
    %c0_i32_0 = arith.constant 0 : i32
    %c0_i32_1 = arith.constant 0 : i32
    %c0_i32_2 = arith.constant 0 : i32
    %0 = tpu.memref_slice %arg0[%c0_i32_0, %c0_i32_1, %c0_i32_2] : memref<3x32x256xf32, #tpu.memory_space<any>> -> memref<3x1x256xf32, #tpu.memory_space<any>>
    %c0_i32_3 = arith.constant 0 : i32
    %c0_i32_4 = arith.constant 0 : i32
    %c0_i32_5 = arith.constant 0 : i32
    %1 = tpu.memref_slice %arg1[%c0_i32_3, %c0_i32_4, %c0_i32_5] : memref<3x8x256xf32, #tpu.memory_space<any>> -> memref<3x1x256xf32, #tpu.memory_space<any>>
    %2 = tpu.memref_slice %arg2[%c0_i32] : memref<8x!tpu.dma_semaphore, #tpu.memory_space<semaphore_mem>> -> memref<1x!tpu.dma_semaphore, #tpu.memory_space<semaphore_mem>>
    %3 = tpu.memref_squeeze %2 : memref<1x!tpu.dma_semaphore, #tpu.memory_space<semaphore_mem>> -> memref<!tpu.dma_semaphore, #tpu.memory_space<semaphore_mem>>
    tpu.enqueue_dma source(%0 : memref<3x1x256xf32, #tpu.memory_space<any>>) target(%1 : memref<3x1x256xf32, #tpu.memory_space<any>>) target_semaphore(%3 : memref<!tpu.dma_semaphore, #tpu.memory_space<semaphore_mem>>)
    %c1_i32 = arith.constant 1 : i32
    %c0_i32_6 = arith.constant 0 : i32
    %c4_i32 = arith.constant 4 : i32
    %c0_i32_7 = arith.constant 0 : i32
    %4 = tpu.memref_slice %arg0[%c0_i32_6, %c4_i32, %c0_i32_7] : memref<3x32x256xf32, #tpu.memory_space<any>> -> memref<3x1x256xf32, #tpu.memory_space<any>>
    %c0_i32_8 = arith.constant 0 : i32
    %c1_i32_9 = arith.constant 1 : i32
    %c0_i32_10 = arith.constant 0 : i32
    %5 = tpu.memref_slice %arg1[%c0_i32_8, %c1_i32_9, %c0_i32_10] : memref<3x8x256xf32, #tpu.memory_space<any>> -> memref<3x1x256xf32, #tpu.memory_space<any>>
    %6 = tpu.memref_slice %arg2[%c1_i32] : memref<8x!tpu.dma_semaphore, #tpu.memory_space<semaphore_mem>> -> memref<1x!tpu.dma_semaphore, #tpu.memory_space<semaphore_mem>>
    %7 = tpu.memref_squeeze %6 : memref<1x!tpu.dma_semaphore, #tpu.memory_space<semaphore_mem>> -> memref<!tpu.dma_semaphore, #tpu.memory_space<semaphore_mem>>
    tpu.enqueue_dma source(%4 : memref<3x1x256xf32, #tpu.memory_space<any>>) target(%5 : memref<3x1x256xf32, #tpu.memory_space<any>>) target_semaphore(%7 : memref<!tpu.dma_semaphore, #tpu.memory_space<semaphore_mem>>)
    %c2_i32 = arith.constant 2 : i32
    %c0_i32_11 = arith.constant 0 : i32
    %c8_i32 = arith.constant 8 : i32
    %c0_i32_12 = arith.constant 0 : i32
    %8 = tpu.memref_slice %arg0[%c0_i32_11, %c8_i32, %c0_i32_12] : memref<3x32x256xf32, #tpu.memory_space<any>> -> memref<3x1x256xf32, #tpu.memory_space<any>>
    %c0_i32_13 = arith.constant 0 : i32
    %c2_i32_14 = arith.constant 2 : i32
    %c0_i32_15 = arith.constant 0 : i32
    %9 = tpu.memref_slice %arg1[%c0_i32_13, %c2_i32_14, %c0_i32_15] : memref<3x8x256xf32, #tpu.memory_space<any>> -> memref<3x1x256xf32, #tpu.memory_space<any>>
    %10 = tpu.memref_slice %arg2[%c2_i32] : memref<8x!tpu.dma_semaphore, #tpu.memory_space<semaphore_mem>> -> memref<1x!tpu.dma_semaphore, #tpu.memory_space<semaphore_mem>>
    %11 = tpu.memref_squeeze %10 : memref<1x!tpu.dma_semaphore, #tpu.memory_space<semaphore_mem>> -> memref<!tpu.dma_semaphore, #tpu.memory_space<semaphore_mem>>
    tpu.enqueue_dma source(%8 : memref<3x1x256xf32, #tpu.memory_space<any>>) target(%9 : memref<3x1x256xf32, #tpu.memory_space<any>>) target_semaphore(%11 : memref<!tpu.dma_semaphore, #tpu.memory_space<semaphore_mem>>)
    %c3_i32 = arith.constant 3 : i32
    %c0_i32_16 = arith.constant 0 : i32
    %c13_i32 = arith.constant 13 : i32
    %c0_i32_17 = arith.constant 0 : i32
    %12 = tpu.memref_slice %arg0[%c0_i32_16, %c13_i32, %c0_i32_17] : memref<3x32x256xf32, #tpu.memory_space<any>> -> memref<3x1x256xf32, #tpu.memory_space<any>>
    %c0_i32_18 = arith.constant 0 : i32
    %c3_i32_19 = arith.constant 3 : i32
    %c0_i32_20 = arith.constant 0 : i32
    %13 = tpu.memref_slice %arg1[%c0_i32_18, %c3_i32_19, %c0_i32_20] : memref<3x8x256xf32, #tpu.memory_space<any>> -> memref<3x1x256xf32, #tpu.memory_space<any>>
    %14 = tpu.memref_slice %arg2[%c3_i32] : memref<8x!tpu.dma_semaphore, #tpu.memory_space<semaphore_mem>> -> memref<1x!tpu.dma_semaphore, #tpu.memory_space<semaphore_mem>>
    %15 = tpu.memref_squeeze %14 : memref<1x!tpu.dma_semaphore, #tpu.memory_space<semaphore_mem>> -> memref<!tpu.dma_semaphore, #tpu.memory_space<semaphore_mem>>
    tpu.enqueue_dma source(%12 : memref<3x1x256xf32, #tpu.memory_space<any>>) target(%13 : memref<3x1x256xf32, #tpu.memory_space<any>>) target_semaphore(%15 : memref<!tpu.dma_semaphore, #tpu.memory_space<semaphore_mem>>)
    %c4_i32_21 = arith.constant 4 : i32
    %c0_i32_22 = arith.constant 0 : i32
    %c17_i32 = arith.constant 17 : i32
    %c0_i32_23 = arith.constant 0 : i32
    %16 = tpu.memref_slice %arg0[%c0_i32_22, %c17_i32, %c0_i32_23] : memref<3x32x256xf32, #tpu.memory_space<any>> -> memref<3x1x256xf32, #tpu.memory_space<any>>
    %c0_i32_24 = arith.constant 0 : i32
    %c4_i32_25 = arith.constant 4 : i32
    %c0_i32_26 = arith.constant 0 : i32
    %17 = tpu.memref_slice %arg1[%c0_i32_24, %c4_i32_25, %c0_i32_26] : memref<3x8x256xf32, #tpu.memory_space<any>> -> memref<3x1x256xf32, #tpu.memory_space<any>>
    %18 = tpu.memref_slice %arg2[%c4_i32_21] : memref<8x!tpu.dma_semaphore, #tpu.memory_space<semaphore_mem>> -> memref<1x!tpu.dma_semaphore, #tpu.memory_space<semaphore_mem>>
    %19 = tpu.memref_squeeze %18 : memref<1x!tpu.dma_semaphore, #tpu.memory_space<semaphore_mem>> -> memref<!tpu.dma_semaphore, #tpu.memory_space<semaphore_mem>>
    tpu.enqueue_dma source(%16 : memref<3x1x256xf32, #tpu.memory_space<any>>) target(%17 : memref<3x1x256xf32, #tpu.memory_space<any>>) target_semaphore(%19 : memref<!tpu.dma_semaphore, #tpu.memory_space<semaphore_mem>>)
    %c5_i32 = arith.constant 5 : i32
    %c0_i32_27 = arith.constant 0 : i32
    %c22_i32 = arith.constant 22 : i32
    %c0_i32_28 = arith.constant 0 : i32
    %20 = tpu.memref_slice %arg0[%c0_i32_27, %c22_i32, %c0_i32_28] : memref<3x32x256xf32, #tpu.memory_space<any>> -> memref<3x1x256xf32, #tpu.memory_space<any>>
    %c0_i32_29 = arith.constant 0 : i32
    %c5_i32_30 = arith.constant 5 : i32
    %c0_i32_31 = arith.constant 0 : i32
    %21 = tpu.memref_slice %arg1[%c0_i32_29, %c5_i32_30, %c0_i32_31] : memref<3x8x256xf32, #tpu.memory_space<any>> -> memref<3x1x256xf32, #tpu.memory_space<any>>
    %22 = tpu.memref_slice %arg2[%c5_i32] : memref<8x!tpu.dma_semaphore, #tpu.memory_space<semaphore_mem>> -> memref<1x!tpu.dma_semaphore, #tpu.memory_space<semaphore_mem>>
    %23 = tpu.memref_squeeze %22 : memref<1x!tpu.dma_semaphore, #tpu.memory_space<semaphore_mem>> -> memref<!tpu.dma_semaphore, #tpu.memory_space<semaphore_mem>>
    tpu.enqueue_dma source(%20 : memref<3x1x256xf32, #tpu.memory_space<any>>) target(%21 : memref<3x1x256xf32, #tpu.memory_space<any>>) target_semaphore(%23 : memref<!tpu.dma_semaphore, #tpu.memory_space<semaphore_mem>>)
    %c6_i32 = arith.constant 6 : i32
    %c0_i32_32 = arith.constant 0 : i32
    %c26_i32 = arith.constant 26 : i32
    %c0_i32_33 = arith.constant 0 : i32
    %24 = tpu.memref_slice %arg0[%c0_i32_32, %c26_i32, %c0_i32_33] : memref<3x32x256xf32, #tpu.memory_space<any>> -> memref<3x1x256xf32, #tpu.memory_space<any>>
    %c0_i32_34 = arith.constant 0 : i32
    %c6_i32_35 = arith.constant 6 : i32
    %c0_i32_36 = arith.constant 0 : i32
    %25 = tpu.memref_slice %arg1[%c0_i32_34, %c6_i32_35, %c0_i32_36] : memref<3x8x256xf32, #tpu.memory_space<any>> -> memref<3x1x256xf32, #tpu.memory_space<any>>
    %26 = tpu.memref_slice %arg2[%c6_i32] : memref<8x!tpu.dma_semaphore, #tpu.memory_space<semaphore_mem>> -> memref<1x!tpu.dma_semaphore, #tpu.memory_space<semaphore_mem>>
    %27 = tpu.memref_squeeze %26 : memref<1x!tpu.dma_semaphore, #tpu.memory_space<semaphore_mem>> -> memref<!tpu.dma_semaphore, #tpu.memory_space<semaphore_mem>>
    tpu.enqueue_dma source(%24 : memref<3x1x256xf32, #tpu.memory_space<any>>) target(%25 : memref<3x1x256xf32, #tpu.memory_space<any>>) target_semaphore(%27 : memref<!tpu.dma_semaphore, #tpu.memory_space<semaphore_mem>>)
    %c7_i32 = arith.constant 7 : i32
    %c0_i32_37 = arith.constant 0 : i32
    %c31_i32 = arith.constant 31 : i32
    %c0_i32_38 = arith.constant 0 : i32
    %28 = tpu.memref_slice %arg0[%c0_i32_37, %c31_i32, %c0_i32_38] : memref<3x32x256xf32, #tpu.memory_space<any>> -> memref<3x1x256xf32, #tpu.memory_space<any>>
    %c0_i32_39 = arith.constant 0 : i32
    %c7_i32_40 = arith.constant 7 : i32
    %c0_i32_41 = arith.constant 0 : i32
    %29 = tpu.memref_slice %arg1[%c0_i32_39, %c7_i32_40, %c0_i32_41] : memref<3x8x256xf32, #tpu.memory_space<any>> -> memref<3x1x256xf32, #tpu.memory_space<any>>
    %30 = tpu.memref_slice %arg2[%c7_i32] : memref<8x!tpu.dma_semaphore, #tpu.memory_space<semaphore_mem>> -> memref<1x!tpu.dma_semaphore, #tpu.memory_space<semaphore_mem>>
    %31 = tpu.memref_squeeze %30 : memref<1x!tpu.dma_semaphore, #tpu.memory_space<semaphore_mem>> -> memref<!tpu.dma_semaphore, #tpu.memory_space<semaphore_mem>>
    tpu.enqueue_dma source(%28 : memref<3x1x256xf32, #tpu.memory_space<any>>) target(%29 : memref<3x1x256xf32, #tpu.memory_space<any>>) target_semaphore(%31 : memref<!tpu.dma_semaphore, #tpu.memory_space<semaphore_mem>>)
    %c0_i32_42 = arith.constant 0 : i32
    %c0_i32_43 = arith.constant 0 : i32
    %c0_i32_44 = arith.constant 0 : i32
    %c0_i32_45 = arith.constant 0 : i32
    %32 = tpu.memref_slice %arg0[%c0_i32_43, %c0_i32_44, %c0_i32_45] : memref<3x32x256xf32, #tpu.memory_space<any>> -> memref<3x1x256xf32, #tpu.memory_space<any>>
    %c0_i32_46 = arith.constant 0 : i32
    %c0_i32_47 = arith.constant 0 : i32
    %c0_i32_48 = arith.constant 0 : i32
    %33 = tpu.memref_slice %arg1[%c0_i32_46, %c0_i32_47, %c0_i32_48] : memref<3x8x256xf32, #tpu.memory_space<any>> -> memref<3x1x256xf32, #tpu.memory_space<any>>
    %34 = tpu.memref_slice %arg2[%c0_i32_42] : memref<8x!tpu.dma_semaphore, #tpu.memory_space<semaphore_mem>> -> memref<1x!tpu.dma_semaphore, #tpu.memory_space<semaphore_mem>>
    %35 = tpu.memref_squeeze %34 : memref<1x!tpu.dma_semaphore, #tpu.memory_space<semaphore_mem>> -> memref<!tpu.dma_semaphore, #tpu.memory_space<semaphore_mem>>
    tpu.wait_dma2 semaphore(%35 : memref<!tpu.dma_semaphore, #tpu.memory_space<semaphore_mem>>) src(%32 : memref<3x1x256xf32, #tpu.memory_space<any>>) dst(%33 : memref<3x1x256xf32, #tpu.memory_space<any>>)
    %c1_i32_49 = arith.constant 1 : i32
    %c0_i32_50 = arith.constant 0 : i32
    %c4_i32_51 = arith.constant 4 : i32
    %c0_i32_52 = arith.constant 0 : i32
    %36 = tpu.memref_slice %arg0[%c0_i32_50, %c4_i32_51, %c0_i32_52] : memref<3x32x256xf32, #tpu.memory_space<any>> -> memref<3x1x256xf32, #tpu.memory_space<any>>
    %c0_i32_53 = arith.constant 0 : i32
    %c1_i32_54 = arith.constant 1 : i32
    %c0_i32_55 = arith.constant 0 : i32
    %37 = tpu.memref_slice %arg1[%c0_i32_53, %c1_i32_54, %c0_i32_55] : memref<3x8x256xf32, #tpu.memory_space<any>> -> memref<3x1x256xf32, #tpu.memory_space<any>>
    %38 = tpu.memref_slice %arg2[%c1_i32_49] : memref<8x!tpu.dma_semaphore, #tpu.memory_space<semaphore_mem>> -> memref<1x!tpu.dma_semaphore, #tpu.memory_space<semaphore_mem>>
    %39 = tpu.memref_squeeze %38 : memref<1x!tpu.dma_semaphore, #tpu.memory_space<semaphore_mem>> -> memref<!tpu.dma_semaphore, #tpu.memory_space<semaphore_mem>>
    tpu.wait_dma2 semaphore(%39 : memref<!tpu.dma_semaphore, #tpu.memory_space<semaphore_mem>>) src(%36 : memref<3x1x256xf32, #tpu.memory_space<any>>) dst(%37 : memref<3x1x256xf32, #tpu.memory_space<any>>)
    %c2_i32_56 = arith.constant 2 : i32
    %c0_i32_57 = arith.constant 0 : i32
    %c8_i32_58 = arith.constant 8 : i32
    %c0_i32_59 = arith.constant 0 : i32
    %40 = tpu.memref_slice %arg0[%c0_i32_57, %c8_i32_58, %c0_i32_59] : memref<3x32x256xf32, #tpu.memory_space<any>> -> memref<3x1x256xf32, #tpu.memory_space<any>>
    %c0_i32_60 = arith.constant 0 : i32
    %c2_i32_61 = arith.constant 2 : i32
    %c0_i32_62 = arith.constant 0 : i32
    %41 = tpu.memref_slice %arg1[%c0_i32_60, %c2_i32_61, %c0_i32_62] : memref<3x8x256xf32, #tpu.memory_space<any>> -> memref<3x1x256xf32, #tpu.memory_space<any>>
    %42 = tpu.memref_slice %arg2[%c2_i32_56] : memref<8x!tpu.dma_semaphore, #tpu.memory_space<semaphore_mem>> -> memref<1x!tpu.dma_semaphore, #tpu.memory_space<semaphore_mem>>
    %43 = tpu.memref_squeeze %42 : memref<1x!tpu.dma_semaphore, #tpu.memory_space<semaphore_mem>> -> memref<!tpu.dma_semaphore, #tpu.memory_space<semaphore_mem>>
    tpu.wait_dma2 semaphore(%43 : memref<!tpu.dma_semaphore, #tpu.memory_space<semaphore_mem>>) src(%40 : memref<3x1x256xf32, #tpu.memory_space<any>>) dst(%41 : memref<3x1x256xf32, #tpu.memory_space<any>>)
    %c3_i32_63 = arith.constant 3 : i32
    %c0_i32_64 = arith.constant 0 : i32
    %c13_i32_65 = arith.constant 13 : i32
    %c0_i32_66 = arith.constant 0 : i32
    %44 = tpu.memref_slice %arg0[%c0_i32_64, %c13_i32_65, %c0_i32_66] : memref<3x32x256xf32, #tpu.memory_space<any>> -> memref<3x1x256xf32, #tpu.memory_space<any>>
    %c0_i32_67 = arith.constant 0 : i32
    %c3_i32_68 = arith.constant 3 : i32
    %c0_i32_69 = arith.constant 0 : i32
    %45 = tpu.memref_slice %arg1[%c0_i32_67, %c3_i32_68, %c0_i32_69] : memref<3x8x256xf32, #tpu.memory_space<any>> -> memref<3x1x256xf32, #tpu.memory_space<any>>
    %46 = tpu.memref_slice %arg2[%c3_i32_63] : memref<8x!tpu.dma_semaphore, #tpu.memory_space<semaphore_mem>> -> memref<1x!tpu.dma_semaphore, #tpu.memory_space<semaphore_mem>>
    %47 = tpu.memref_squeeze %46 : memref<1x!tpu.dma_semaphore, #tpu.memory_space<semaphore_mem>> -> memref<!tpu.dma_semaphore, #tpu.memory_space<semaphore_mem>>
    tpu.wait_dma2 semaphore(%47 : memref<!tpu.dma_semaphore, #tpu.memory_space<semaphore_mem>>) src(%44 : memref<3x1x256xf32, #tpu.memory_space<any>>) dst(%45 : memref<3x1x256xf32, #tpu.memory_space<any>>)
    %c4_i32_70 = arith.constant 4 : i32
    %c0_i32_71 = arith.constant 0 : i32
    %c17_i32_72 = arith.constant 17 : i32
    %c0_i32_73 = arith.constant 0 : i32
    %48 = tpu.memref_slice %arg0[%c0_i32_71, %c17_i32_72, %c0_i32_73] : memref<3x32x256xf32, #tpu.memory_space<any>> -> memref<3x1x256xf32, #tpu.memory_space<any>>
    %c0_i32_74 = arith.constant 0 : i32
    %c4_i32_75 = arith.constant 4 : i32
    %c0_i32_76 = arith.constant 0 : i32
    %49 = tpu.memref_slice %arg1[%c0_i32_74, %c4_i32_75, %c0_i32_76] : memref<3x8x256xf32, #tpu.memory_space<any>> -> memref<3x1x256xf32, #tpu.memory_space<any>>
    %50 = tpu.memref_slice %arg2[%c4_i32_70] : memref<8x!tpu.dma_semaphore, #tpu.memory_space<semaphore_mem>> -> memref<1x!tpu.dma_semaphore, #tpu.memory_space<semaphore_mem>>
    %51 = tpu.memref_squeeze %50 : memref<1x!tpu.dma_semaphore, #tpu.memory_space<semaphore_mem>> -> memref<!tpu.dma_semaphore, #tpu.memory_space<semaphore_mem>>
    tpu.wait_dma2 semaphore(%51 : memref<!tpu.dma_semaphore, #tpu.memory_space<semaphore_mem>>) src(%48 : memref<3x1x256xf32, #tpu.memory_space<any>>) dst(%49 : memref<3x1x256xf32, #tpu.memory_space<any>>)
    %c5_i32_77 = arith.constant 5 : i32
    %c0_i32_78 = arith.constant 0 : i32
    %c22_i32_79 = arith.constant 22 : i32
    %c0_i32_80 = arith.constant 0 : i32
    %52 = tpu.memref_slice %arg0[%c0_i32_78, %c22_i32_79, %c0_i32_80] : memref<3x32x256xf32, #tpu.memory_space<any>> -> memref<3x1x256xf32, #tpu.memory_space<any>>
    %c0_i32_81 = arith.constant 0 : i32
    %c5_i32_82 = arith.constant 5 : i32
    %c0_i32_83 = arith.constant 0 : i32
    %53 = tpu.memref_slice %arg1[%c0_i32_81, %c5_i32_82, %c0_i32_83] : memref<3x8x256xf32, #tpu.memory_space<any>> -> memref<3x1x256xf32, #tpu.memory_space<any>>
    %54 = tpu.memref_slice %arg2[%c5_i32_77] : memref<8x!tpu.dma_semaphore, #tpu.memory_space<semaphore_mem>> -> memref<1x!tpu.dma_semaphore, #tpu.memory_space<semaphore_mem>>
    %55 = tpu.memref_squeeze %54 : memref<1x!tpu.dma_semaphore, #tpu.memory_space<semaphore_mem>> -> memref<!tpu.dma_semaphore, #tpu.memory_space<semaphore_mem>>
    tpu.wait_dma2 semaphore(%55 : memref<!tpu.dma_semaphore, #tpu.memory_space<semaphore_mem>>) src(%52 : memref<3x1x256xf32, #tpu.memory_space<any>>) dst(%53 : memref<3x1x256xf32, #tpu.memory_space<any>>)
    %c6_i32_84 = arith.constant 6 : i32
    %c0_i32_85 = arith.constant 0 : i32
    %c26_i32_86 = arith.constant 26 : i32
    %c0_i32_87 = arith.constant 0 : i32
    %56 = tpu.memref_slice %arg0[%c0_i32_85, %c26_i32_86, %c0_i32_87] : memref<3x32x256xf32, #tpu.memory_space<any>> -> memref<3x1x256xf32, #tpu.memory_space<any>>
    %c0_i32_88 = arith.constant 0 : i32
    %c6_i32_89 = arith.constant 6 : i32
    %c0_i32_90 = arith.constant 0 : i32
    %57 = tpu.memref_slice %arg1[%c0_i32_88, %c6_i32_89, %c0_i32_90] : memref<3x8x256xf32, #tpu.memory_space<any>> -> memref<3x1x256xf32, #tpu.memory_space<any>>
    %58 = tpu.memref_slice %arg2[%c6_i32_84] : memref<8x!tpu.dma_semaphore, #tpu.memory_space<semaphore_mem>> -> memref<1x!tpu.dma_semaphore, #tpu.memory_space<semaphore_mem>>
    %59 = tpu.memref_squeeze %58 : memref<1x!tpu.dma_semaphore, #tpu.memory_space<semaphore_mem>> -> memref<!tpu.dma_semaphore, #tpu.memory_space<semaphore_mem>>
    tpu.wait_dma2 semaphore(%59 : memref<!tpu.dma_semaphore, #tpu.memory_space<semaphore_mem>>) src(%56 : memref<3x1x256xf32, #tpu.memory_space<any>>) dst(%57 : memref<3x1x256xf32, #tpu.memory_space<any>>)
    %c7_i32_91 = arith.constant 7 : i32
    %c0_i32_92 = arith.constant 0 : i32
    %c31_i32_93 = arith.constant 31 : i32
    %c0_i32_94 = arith.constant 0 : i32
    %60 = tpu.memref_slice %arg0[%c0_i32_92, %c31_i32_93, %c0_i32_94] : memref<3x32x256xf32, #tpu.memory_space<any>> -> memref<3x1x256xf32, #tpu.memory_space<any>>
    %c0_i32_95 = arith.constant 0 : i32
    %c7_i32_96 = arith.constant 7 : i32
    %c0_i32_97 = arith.constant 0 : i32
    %61 = tpu.memref_slice %arg1[%c0_i32_95, %c7_i32_96, %c0_i32_97] : memref<3x8x256xf32, #tpu.memory_space<any>> -> memref<3x1x256xf32, #tpu.memory_space<any>>
    %62 = tpu.memref_slice %arg2[%c7_i32_91] : memref<8x!tpu.dma_semaphore, #tpu.memory_space<semaphore_mem>> -> memref<1x!tpu.dma_semaphore, #tpu.memory_space<semaphore_mem>>
    %63 = tpu.memref_squeeze %62 : memref<1x!tpu.dma_semaphore, #tpu.memory_space<semaphore_mem>> -> memref<!tpu.dma_semaphore, #tpu.memory_space<semaphore_mem>>
    tpu.wait_dma2 semaphore(%63 : memref<!tpu.dma_semaphore, #tpu.memory_space<semaphore_mem>>) src(%60 : memref<3x1x256xf32, #tpu.memory_space<any>>) dst(%61 : memref<3x1x256xf32, #tpu.memory_space<any>>)
    return
  }
}

</mosaic_0001>

<bundles_post_ra>
// kernel: tpu_custom_call.1
= control target key start
LH: loop header
LB: loop body
LE: loop exit
PB: predicated region body
PF: predicated region fallthrough
CT: control target
= control target key end

     0   :  { %s346_s6 = smov 1024   ;;  %s347_s7 = smov 256   ;;  %s482_s0 = inlined_call_operand.hbm [shape: f32[3,32,256], index: 0, kind: input, shape index: {}]   ;;  %s483_s1 = inlined_call_operand.hbm [shape: f32[3,8,256], index: 1, kind: output, shape index: {}]  }
   0x1   :  { %18 = sst [smem:[#allocation4]] %s346_s6  ;;  %s348_s8 = smov 2  }
   0x2   :  { %20 = sst [smem:[#allocation4 + $0x1]] %s347_s7  ;;  %s349_s9 = smov 128  }
   0x3   :  { %22 = sst [smem:[#allocation4 + $0x2]] %s348_s8  ;;  %s350_s10 = smov 1  }
   0x4   :  { %24 = sst [smem:[#allocation4 + $0x3]] %s349_s9  ;;  %s351_s11 = smov [#allocation2]  }
   0x5   :  { %26 = sst [smem:[#allocation4 + $0x4]] %s349_s9  ;;  %s352_s12 = smov [#allocation3]  }
   0x6   :  { %28 = sst [smem:[#allocation4 + $0x5]] %s350_s10  ;;  %s353_s13 = smov 0  }
   0x7   :  { %30 = dma.general %s482_s0, 96, %s483_s1, %s351_s11, %s352_s12, [#allocation4], %s353_s13, 0  }
   0x8   :  { %46 = sst [smem:[#allocation6]] %s346_s6  ;;  %s31_s20 = scalar_lea.hbm %s482_s0, 64 }
   0x9   :  { %48 = sst [smem:[#allocation6 + $0x1]] %s347_s7  ;;  %s32_s23 = scalar_lea.hbm %s483_s1, 16 }
   0xa   :  { %50 = sst [smem:[#allocation6 + $0x2]] %s348_s8  ;;  %s354_s24 = smov [#allocation2 + $0x1]  }
   0xb   :  { %52 = sst [smem:[#allocation6 + $0x3]] %s349_s9  ;;  %s355_s25 = smov [#allocation5]  }
   0xc   :  { %54 = sst [smem:[#allocation6 + $0x4]] %s349_s9  ;;  %s59_s28 = scalar_lea.hbm %s482_s0, 256 }
   0xd   :  { %56 = sst [smem:[#allocation6 + $0x5]] %s350_s10  ;;  %s60_s2 = scalar_lea.hbm %s483_s1, 32 }
   0xe   :  { %58 = dma.general %s31_s20, 96, %s32_s23, %s354_s24, %s355_s25, [#allocation6], %s353_s13, 0  }
   0xf   :  { %74 = sst [smem:[#allocation8]] %s346_s6  ;;  %s356_s3 = smov [#allocation2 + $0x2]  }
  0x10   :  { %76 = sst [smem:[#allocation8 + $0x1]] %s347_s7  ;;  %s357_s4 = smov [#allocation7]  }
  0x11   :  { %78 = sst [smem:[#allocation8 + $0x2]] %s348_s8  ;;  %s87_s12 = scalar_lea.hbm %s482_s0, 336 }
  0x12   :  { %80 = sst [smem:[#allocation8 + $0x3]] %s349_s9  ;;  %s88_s16 = scalar_lea.hbm %s483_s1, 48 }
  0x13   :  { %82 = sst [smem:[#allocation8 + $0x4]] %s349_s9  ;;  %s358_s17 = smov [#allocation2 + $0x3]  }
  0x14   :  { %84 = sst [smem:[#allocation8 + $0x5]] %s350_s10  ;;  %s359_s18 = smov [#allocation9]  }
  0x15   :  { %86 = dma.general %s59_s28, 96, %s60_s2, %s356_s3, %s357_s4, [#allocation8], %s353_s13, 0  }
  0x16   :  { %102 = sst [smem:[#allocation10]] %s346_s6  ;;  %s115_s21 = scalar_lea.hbm %s482_s0, 528 }
  0x17   :  { %104 = sst [smem:[#allocation10 + $0x1]] %s347_s7  ;;  %s116_s24 = scalar_lea.hbm %s483_s1, 64 }
  0x18   :  { %106 = sst [smem:[#allocation10 + $0x2]] %s348_s8  ;;  %s360_s25 = smov [#allocation2 + $0x4]  }
  0x19   :  { %108 = sst [smem:[#allocation10 + $0x3]] %s349_s9  ;;  %s361_s26 = smov [#allocation11]  }
  0x1a   :  { %110 = sst [smem:[#allocation10 + $0x4]] %s349_s9  ;;  %s143_s29 = scalar_lea.hbm %s482_s0, 608 }
  0x1b   :  { %112 = sst [smem:[#allocation10 + $0x5]] %s350_s10  ;;  %s144_s3 = scalar_lea.hbm %s483_s1, 80 }
  0x1c   :  { %114 = dma.general %s87_s12, 96, %s88_s16, %s358_s17, %s359_s18, [#allocation10], %s353_s13, 0  }
  0x1d   :  { %130 = sst [smem:[#allocation12]] %s346_s6  ;;  %s362_s4 = smov [#allocation2 + $0x5]  }
  0x1e   :  { %132 = sst [smem:[#allocation12 + $0x1]] %s347_s7  ;;  %s363_s5 = smov [#allocation13]  }
  0x1f   :  { %134 = sst [smem:[#allocation12 + $0x2]] %s348_s8  ;;  %s171_s14 = scalar_lea.hbm %s482_s0, 800 }
  0x20   :  { %136 = sst [smem:[#allocation12 + $0x3]] %s349_s9  ;;  %s172_s17 = scalar_lea.hbm %s483_s1, 96 }
  0x21   :  { %138 = sst [smem:[#allocation12 + $0x4]] %s349_s9  ;;  %s364_s18 = smov [#allocation2 + $0x6]  }
  0x22   :  { %140 = sst [smem:[#allocation12 + $0x5]] %s350_s10  ;;  %s365_s19 = smov [#allocation15]  }
  0x23   :  { %142 = dma.general %s115_s21, 96, %s116_s24, %s360_s25, %s361_s26, [#allocation12], %s353_s13, 0  }
  0x24   :  { %158 = sst [smem:[#allocation14]] %s346_s6  ;;  %s199_s22 = scalar_lea.hbm %s482_s0, 880 }
  0x25   :  { %160 = sst [smem:[#allocation14 + $0x1]] %s347_s7  ;;  %s200_s25 = scalar_lea.hbm %s483_s1, 112 }
  0x26   :  { %162 = sst [smem:[#allocation14 + $0x2]] %s348_s8  ;;  %s366_s26 = smov [#allocation2 + $0x7]  }
  0x27   :  { %164 = sst [smem:[#allocation14 + $0x3]] %s349_s9 }
  0x28   :  { %166 = sst [smem:[#allocation14 + $0x4]] %s349_s9 }
  0x29   :  { %168 = sst [smem:[#allocation14 + $0x5]] %s350_s10 }
  0x2a   :  { %170 = dma.general %s143_s29, 96, %s144_s3, %s362_s4, %s363_s5, [#allocation14], %s353_s13, 0  }
  0x2b   :  { %186 = sst [smem:[#allocation16]] %s346_s6 }
  0x2c   :  { %188 = sst [smem:[#allocation16 + $0x1]] %s347_s7 }
  0x2d   :  { %190 = sst [smem:[#allocation16 + $0x2]] %s348_s8 }
  0x2e   :  { %192 = sst [smem:[#allocation16 + $0x3]] %s349_s9 }
  0x2f   :  { %194 = sst [smem:[#allocation16 + $0x4]] %s349_s9 }
  0x30   :  { %196 = sst [smem:[#allocation16 + $0x5]] %s350_s10 }
  0x31   :  { %198 = dma.general %s171_s14, 96, %s172_s17, %s364_s18, %s365_s19, [#allocation16], %s353_s13, 0  }
  0x32   :  { %214 = sst [smem:[#allocation18]] %s346_s6  ;;  %s367_s6 = smov [#allocation17]  }
  0x33   :  { %216 = sst [smem:[#allocation18 + $0x1]] %s347_s7 }
  0x34   :  { %218 = sst [smem:[#allocation18 + $0x2]] %s348_s8 }
  0x35   :  { %220 = sst [smem:[#allocation18 + $0x3]] %s349_s9 }
  0x36   :  { %222 = sst [smem:[#allocation18 + $0x4]] %s349_s9 }
  0x37   :  { %224 = sst [smem:[#allocation18 + $0x5]] %s350_s10 }
  0x38   :  { %226 = dma.general %s199_s22, 96, %s200_s25, %s366_s26, %s367_s6, [#allocation18], %s353_s13, 0  }
  0x39   :  { %330 = dma.done.wait [#allocation2], 96 }
  0x3a   :  { %331 = vsyncadd [#allocation2], 4294967200 }
  0x3b   :  { %332 = dma.done.wait [#allocation2 + $0x1], 96 }
  0x3c   :  { %333 = vsyncadd [#allocation2 + $0x1], 4294967200 }
  0x3d   :  { %334 = dma.done.wait [#allocation2 + $0x2], 96 }
  0x3e   :  { %335 = vsyncadd [#allocation2 + $0x2], 4294967200 }
  0x3f   :  { %336 = dma.done.wait [#allocation2 + $0x3], 96 }
  0x40   :  { %337 = vsyncadd [#allocation2 + $0x3], 4294967200 }
  0x41   :  { %338 = dma.done.wait [#allocation2 + $0x4], 96 }
  0x42   :  { %339 = vsyncadd [#allocation2 + $0x4], 4294967200 }
  0x43   :  { %340 = dma.done.wait [#allocation2 + $0x5], 96 }
  0x44   :  { %341 = vsyncadd [#allocation2 + $0x5], 4294967200 }
  0x45   :  { %342 = dma.done.wait [#allocation2 + $0x6], 96 }
  0x46   :  { %343 = vsyncadd [#allocation2 + $0x6], 4294967200 }
  0x47   :  { %344 = dma.done.wait [#allocation2 + $0x7], 96 }
  0x48   :  { %345 = vsyncadd [#allocation2 + $0x7], 4294967200 }
  0x49   :  { %245 = vsyncmov [#allocation2] }
  0x4c   :  { %s246_s0 = vpop.sfrf %245 }
  0x4d   :  { %p300_p0 = scmp.ne.s32.totalorder %s246_s0, 0 }
  0x4f   :  { %250 = shalt.err (%p300_p0)  }
  0x50   :  { %252 = vsyncmov [#allocation2 + $0x1] }
  0x53   :  { %s253_s1 = vpop.sfrf %252 }
  0x54   :  { %p301_p1 = scmp.ne.s32.totalorder %s253_s1, 0 }
  0x56   :  { %257 = shalt.err (%p301_p1)  }
  0x57   :  { %259 = vsyncmov [#allocation2 + $0x2] }
  0x5a   :  { %s260_s7 = vpop.sfrf %259 }
  0x5b   :  { %p302_p2 = scmp.ne.s32.totalorder %s260_s7, 0 }
  0x5d   :  { %264 = shalt.err (%p302_p2)  }
  0x5e   :  { %266 = vsyncmov [#allocation2 + $0x3] }
  0x61   :  { %s267_s8 = vpop.sfrf %266 }
  0x62   :  { %p303_p3 = scmp.ne.s32.totalorder %s267_s8, 0 }
  0x64   :  { %271 = shalt.err (%p303_p3)  }
  0x65   :  { %273 = vsyncmov [#allocation2 + $0x4] }
  0x68   :  { %s274_s9 = vpop.sfrf %273 }
  0x69   :  { %p304_p4 = scmp.ne.s32.totalorder %s274_s9, 0 }
  0x6b   :  { %278 = shalt.err (%p304_p4)  }
  0x6c   :  { %280 = vsyncmov [#allocation2 + $0x5] }
  0x6f   :  { %s281_s10 = vpop.sfrf %280 }
  0x70   :  { %p305_p5 = scmp.ne.s32.totalorder %s281_s10, 0 }
  0x72   :  { %285 = shalt.err (%p305_p5)  }
  0x73   :  { %287 = vsyncmov [#allocation2 + $0x6] }
  0x76   :  { %s288_s13 = vpop.sfrf %287 }
  0x77   :  { %p306_p6 = scmp.ne.s32.totalorder %s288_s13, 0 }
  0x79   :  { %292 = shalt.err (%p306_p6)  }
  0x7a   :  { %294 = vsyncmov [#allocation2 + $0x7] }
  0x7d   :  { %s295_s27 = vpop.sfrf %294 }
  0x7e   :  { %p307_p7 = scmp.ne.s32.totalorder %s295_s27, 0 }
  0x80   :  { %299 = shalt.err (%p307_p7)  }

</bundles_post_ra>
